<compile_context>
chip_gen: v6e
topology: v6e:2x2x1
jax: 0.10.0
libtpu: 0.0.40
codegen_flags: <defaults>
</compile_context>

<pallas_src>
import functools

import jax
import jax.numpy as jnp
from jax.experimental import pallas as pl
from jax.experimental.pallas import tpu as pltpu


def _round_up(x, m):
    return (x + m - 1) // m * m


def painn_message_kernel(cutoff, state_ref, vpack_ref, norm_ref, r3_ref,
                         src_ref, dst_ref, wp1t_ref, bp1_ref, wp2t_ref,
                         bp2_ref, wwt_ref, bw_ref, out_ref, rhs_ref):
    f32 = jnp.float32
    bf16 = jnp.bfloat16
    N, F = state_ref.shape
    TE = norm_ref.shape[0]
    Ed = wwt_ref.shape[0]
    F3 = 3 * F
    k = pl.program_id(0)

    # ---- node-side work: done once at k == 0, reused by every edge tile ---
    @pl.when(k == 0)
    def _():
        s = state_ref[...]                                         # (N, F) f32
        v = vpack_ref[...]                                         # (N, 3F) f32
        h = jnp.dot(s.astype(bf16), wp1t_ref[...],
                    preferred_element_type=f32) + bp1_ref[...]     # (N, F)
        h = h * jax.nn.sigmoid(h)                                  # SiLU (f32)
        phi = jnp.dot(h.astype(bf16), wp2t_ref[...],
                      preferred_element_type=f32) + bp2_ref[...]   # (N, 3F)
        # fused gather RHS: [phi_gate_sv | phi_gate_ev | phi_scal | vx|vy|vz]
        rhs_ref[...] = jnp.concatenate([phi, v], axis=1).astype(bf16)
        # resident output slab, initialised with the residual [s | vx|vy|vz]
        out_ref[...] = jnp.concatenate([s, v], axis=1)

    # ---- per-edge radial features: RBF + cosine cutoff (VPU / EUP, f32) ---
    norm = norm_ref[...]                                           # (TE, 1)
    inv_norm = jnp.where(norm > 0.0,
                         pl.reciprocal(norm, approx=True), 0.0)    # guard r=0
    n_ids = (jax.lax.broadcasted_iota(jnp.int32, (TE, Ed), 1) + 1).astype(f32)
    rbf = jnp.sin(norm * n_ids * (jnp.pi / cutoff)) * inv_norm     # (TE, Ed)
    cc = jnp.where(norm < cutoff,
                   0.5 * (jnp.cos(norm * (jnp.pi / cutoff)) + 1.0),
                   0.0)                                            # (TE, 1)

    # fused filter: one (TE,Ed)x(Ed,3F) MXU pass, bf16 operands, f32 acc
    wfilt = (jnp.dot(rbf.astype(bf16), wwt_ref[...],
                     preferred_element_type=f32) + bw_ref[...]) * cc

    # ---- fused gather: one (TE,N)x(N,6F) one-hot matmul -------------------
    col_ids = jax.lax.broadcasted_iota(jnp.int32, (TE, N), 1)
    gather_oh = (src_ref[...] == col_ids).astype(bf16)             # (TE, N)
    g = jnp.dot(gather_oh, rhs_ref[...], preferred_element_type=f32)  # (TE,6F)

    comb = g[:, :F3] * wfilt                                       # (TE, 3F)
    gate_sv = comb[:, :F]
    gate_ev = comb[:, F:2 * F]
    scal_msg = comb[:, 2 * F:]

    # vector message per spatial component (lane-dense (TE, F) tiles)
    vmsg = []
    for d in range(3):
        dir_d = r3_ref[d] * inv_norm                               # (TE, 1)
        v_src = g[:, F3 + d * F:F3 + (d + 1) * F]                  # (TE, F)
        vmsg.append(v_src * gate_sv + dir_d * gate_ev)

    # ---- fused scatter-add: one (N,TE)x(TE,4F) one-hot matmul -------------
    payload = jnp.concatenate([scal_msg] + vmsg, axis=1).astype(bf16)
    row_ids = jax.lax.broadcasted_iota(jnp.int32, (N, TE), 0)
    scatter_oh = (dst_ref[...] == row_ids).astype(bf16)            # (N, TE)
    out_ref[...] += jnp.dot(scatter_oh, payload,
                            preferred_element_type=f32)            # (N, 4F)


def painn_message(state, state_vec, edge, r_ij, norm_r_ij, params, cutoff,
                  edge_tile=512):
    """state: (N,F), state_vec: (N,F,3), edge: (2,E) int [dst; src],
    r_ij: (E,3), norm_r_ij: (E,1). Returns updated (state, state_vec)."""
    N, F = state.shape
    E = edge.shape[1]
    Ed = params["w_w"].shape[1]
    f32, bf16 = jnp.float32, jnp.bfloat16

    # lane-dense packing of vector features: (N, F, 3) -> (N, 3F) [vx|vy|vz]
    vpack = jnp.transpose(state_vec.astype(f32), (0, 2, 1)).reshape(N, 3 * F)

    # ---- edge-axis tiling + padding (padded edges have cc == 0) -----------
    TE = min(edge_tile, _round_up(E, 8))
    E_pad = _round_up(E, TE)
    pad = E_pad - E
    norm = norm_r_ij.reshape(E, 1).astype(f32)
    r3 = jnp.transpose(r_ij.astype(f32), (1, 0))[:, :, None]       # (3, E, 1)
    src = edge[1].reshape(E, 1).astype(jnp.int32)
    dst = edge[0].reshape(1, E).astype(jnp.int32)
    if pad:
        norm = jnp.concatenate(
            [norm, jnp.full((pad, 1), 2.0 * cutoff, f32)], axis=0)
        r3 = jnp.concatenate([r3, jnp.zeros((3, pad, 1), f32)], axis=1)
        src = jnp.concatenate([src, jnp.zeros((pad, 1), jnp.int32)], axis=0)
        dst = jnp.concatenate([dst, jnp.zeros((1, pad), jnp.int32)], axis=1)
    n_tiles = E_pad // TE

    # ---- weights: pre-transposed, bf16 at the MXU boundary -----------------
    wp1t = params["phi1_w"].T.astype(bf16)                         # (F, F)
    bp1 = params["phi1_b"].reshape(1, F).astype(f32)
    wp2t = params["phi2_w"].T.astype(bf16)                         # (F, 3F)
    bp2 = params["phi2_b"].reshape(1, 3 * F).astype(f32)
    wwt = params["w_w"].T.astype(bf16)                             # (Ed, 3F)
    bw = params["w_b"].reshape(1, 3 * F).astype(f32)

    node2 = lambda k: (0, 0)
    in_specs = [
        pl.BlockSpec((N, F), node2),                    # state
        pl.BlockSpec((N, 3 * F), node2),                # vpack
        pl.BlockSpec((TE, 1), lambda k: (k, 0)),        # norm
        pl.BlockSpec((3, TE, 1), lambda k: (0, k, 0)),  # r3
        pl.BlockSpec((TE, 1), lambda k: (k, 0)),        # edge_src
        pl.BlockSpec((1, TE), lambda k: (0, k)),        # edge_dst
        pl.BlockSpec((F, F), node2),                    # wp1t
        pl.BlockSpec((1, F), node2),                    # bp1
        pl.BlockSpec((F, 3 * F), node2),                # wp2t
        pl.BlockSpec((1, 3 * F), node2),                # bp2
        pl.BlockSpec((Ed, 3 * F), node2),               # wwt
        pl.BlockSpec((1, 3 * F), node2),                # bw
    ]
    out_specs = pl.BlockSpec((N, 4 * F), node2)

    # rough per-step working-set estimate for the scoped-VMEM limit
    est = (
        N * (F + 3 * F + 4 * F) * 4 + N * 6 * F * 2             # node tensors
        + (F * F + F * 3 * F + Ed * 3 * F) * 2 + 7 * F * 4      # weights
        + 2 * 2 * TE * (1 + 3 + 1 + 1) * 4                      # edge tiles (dbuf)
        + 2 * TE * N * 2                                        # one-hots (bf16)
        + TE * (6 * F + 2 * 3 * F + 4 * F) * 4                  # g / wfilt / comb / payload
    )
    vmem_limit = int(min(max(3 * est, 32 * 2**20), 56 * 2**20))

    out = pl.pallas_call(
        functools.partial(painn_message_kernel, float(cutoff)),
        out_shape=jax.ShapeDtypeStruct((N, 4 * F), f32),
        grid_spec=pltpu.PrefetchScalarGridSpec(
            num_scalar_prefetch=0,
            grid=(n_tiles,),
            in_specs=in_specs,
            out_specs=out_specs,
            scratch_shapes=[pltpu.VMEM((N, 6 * F), bf16)],
        ),
        compiler_params=pltpu.CompilerParams(
            dimension_semantics=("arbitrary",),
            vmem_limit_bytes=vmem_limit),
    )(state.astype(f32), vpack, norm, r3, src, dst,
      wp1t, bp1, wp2t, bp2, wwt, bw)

    s_out = out[:, :F]
    v_out = jnp.transpose(out[:, F:].reshape(N, 3, F), (0, 2, 1))   # (N, F, 3)
    return s_out, v_out


def reference(state, state_vec, edge, r_ij, norm_r_ij, params, cutoff):
    """Pure-JAX mirror of the PyTorch PaiNNMessage.forward (f32)."""
    F = state.shape[1]
    Ed = params["w_w"].shape[1]
    n = jnp.arange(Ed, dtype=jnp.float32) + 1.0
    rbf = (jnp.sin(norm_r_ij[..., None] * n * jnp.pi / cutoff)
           / norm_r_ij[..., None])                               # (E, 1, Ed)
    W = rbf @ params["w_w"].T + params["w_b"]                    # (E, 1, 3F)
    cc = jnp.where(norm_r_ij < cutoff,
                   0.5 * (jnp.cos(jnp.pi * norm_r_ij / cutoff) + 1.0),
                   0.0)                                          # (E, 1)
    W = W * cc[:, :, None]
    h = jax.nn.silu(state @ params["phi1_w"].T + params["phi1_b"])
    phi = h @ params["phi2_w"].T + params["phi2_b"]              # (N, 3F)
    comb = phi[edge[1]] * W[:, 0, :]                             # (E, 3F)
    gate_sv, gate_ev, scal = comb[:, :F], comb[:, F:2 * F], comb[:, 2 * F:]
    vm = state_vec[edge[1]] * gate_sv[:, :, None]                # (E, F, 3)
    nr = r_ij / norm_r_ij                                        # (E, 3)
    vm = vm + nr[:, None, :] * gate_ev[:, :, None]
    dsi = jnp.zeros_like(state).at[edge[0]].add(scal)
    dvi = jnp.zeros_like(state_vec).at[edge[0]].add(vm)
    return state + dsi, state_vec + dvi


if __name__ == "__main__":
    state_dim = 32     # F
    edge_dim = 16
    cutoff = 5.0
    N = 8              # nodes (atoms)
    E = 16             # edges

    key = jax.random.PRNGKey(0)
    (k_s, k_v, k_e, k_r, k_w1, k_b1, k_w2, k_b2, k_ww, k_wb) = \
        jax.random.split(key, 10)

    state = jax.random.normal(k_s, (N, state_dim), dtype=jnp.float32)
    state_vec = jax.random.normal(k_v, (N, state_dim, 3), dtype=jnp.float32)
    edge = jax.random.randint(k_e, (2, E), 0, N, dtype=jnp.int32)
    r_ij = 2.0 * jax.random.normal(k_r, (E, 3), dtype=jnp.float32)
    norm_r_ij = jnp.linalg.norm(r_ij, axis=1, keepdims=True)      # (E, 1)

    params = {
        "phi1_w": 0.3 * jax.random.normal(k_w1, (state_dim, state_dim),
                                          dtype=jnp.float32),
        "phi1_b": 0.1 * jax.random.normal(k_b1, (state_dim,), dtype=jnp.float32),
        "phi2_w": 0.3 * jax.random.normal(k_w2, (3 * state_dim, state_dim),
                                          dtype=jnp.float32),
        "phi2_b": 0.1 * jax.random.normal(k_b2, (3 * state_dim,),
                                          dtype=jnp.float32),
        "w_w": 0.3 * jax.random.normal(k_ww, (3 * state_dim, edge_dim),
                                       dtype=jnp.float32),
        "w_b": 0.1 * jax.random.normal(k_wb, (3 * state_dim,),
                                       dtype=jnp.float32),
    }

    s_out, v_out = painn_message(state, state_vec, edge, r_ij, norm_r_ij,
                                 params, cutoff)
    jax.block_until_ready((s_out, v_out))

    s_ref, v_ref = reference(state, state_vec, edge, r_ij, norm_r_ij,
                             params, cutoff)

    assert s_out.shape == (N, state_dim)
    assert v_out.shape == (N, state_dim, 3)
    # bf16 MXU operands + approx reciprocal -> ~1e-2 relative drift vs the
    # f32 reference (one-hot gather/scatter itself is exact in bf16).
    assert jnp.allclose(s_out, s_ref, atol=5e-2, rtol=5e-2)
    assert jnp.allclose(v_out, v_ref, atol=5e-2, rtol=5e-2)

    print("KERNEL_OK")
</pallas_src>

<mosaic_0001>
module attributes {stable_mosaic.version = 11 : i64} {
  func.func @painn_message_kernel(%arg0: i32, %arg1: memref<8x32xf32, #tpu.memory_space<vmem>>, %arg2: memref<8x96xf32, #tpu.memory_space<vmem>>, %arg3: memref<16x1xf32, #tpu.memory_space<vmem>>, %arg4: memref<3x16x1xf32, #tpu.memory_space<vmem>>, %arg5: memref<16x1xi32, #tpu.memory_space<vmem>>, %arg6: memref<1x16xi32, #tpu.memory_space<vmem>>, %arg7: memref<32x32xbf16, #tpu.memory_space<vmem>>, %arg8: memref<1x32xf32, #tpu.memory_space<vmem>>, %arg9: memref<32x96xbf16, #tpu.memory_space<vmem>>, %arg10: memref<1x96xf32, #tpu.memory_space<vmem>>, %arg11: memref<16x96xbf16, #tpu.memory_space<vmem>>, %arg12: memref<1x96xf32, #tpu.memory_space<vmem>>, %arg13: memref<8x128xf32, #tpu.memory_space<vmem>>, %arg14: memref<8x192xbf16, #tpu.memory_space<vmem>>) attributes {dimension_semantics = [#tpu.dimension_semantics<arbitrary>], iteration_bounds = array<i64: 1>, scalar_prefetch = 0 : i64, scratch_operands = 1 : i64, tpu.core_type = #tpu.core_type<tc>, window_params = [{pipeline_mode = #tpu.pipeline_mode<synchronous>, transform_indices = @transform_0, window_bounds = array<i64: 8, 32>}, {pipeline_mode = #tpu.pipeline_mode<synchronous>, transform_indices = @transform_1, window_bounds = array<i64: 8, 96>}, {transform_indices = @transform_2, window_bounds = array<i64: 16, 1>}, {transform_indices = @transform_3, window_bounds = array<i64: 3, 16, 1>}, {transform_indices = @transform_4, window_bounds = array<i64: 16, 1>}, {transform_indices = @transform_5, window_bounds = array<i64: 1, 16>}, {pipeline_mode = #tpu.pipeline_mode<synchronous>, transform_indices = @transform_6, window_bounds = array<i64: 32, 32>}, {pipeline_mode = #tpu.pipeline_mode<synchronous>, transform_indices = @transform_7, window_bounds = array<i64: 1, 32>}, {pipeline_mode = #tpu.pipeline_mode<synchronous>, transform_indices = @transform_8, window_bounds = array<i64: 32, 96>}, {pipeline_mode = #tpu.pipeline_mode<synchronous>, transform_indices = @transform_9, window_bounds = array<i64: 1, 96>}, {pipeline_mode = #tpu.pipeline_mode<synchronous>, transform_indices = @transform_10, window_bounds = array<i64: 16, 96>}, {pipeline_mode = #tpu.pipeline_mode<synchronous>, transform_indices = @transform_11, window_bounds = array<i64: 1, 96>}, {pipeline_mode = #tpu.pipeline_mode<synchronous>, transform_indices = @transform_12, window_bounds = array<i64: 8, 128>}]} {
    %c0_i32 = arith.constant 0 : i32
    %0 = arith.cmpi eq, %arg0, %c0_i32 : i32
    %1 = arith.extui %0 : i1 to i32
    %c0_i32_0 = arith.constant 0 : i32
    %2 = arith.cmpi ne, %1, %c0_i32_0 : i32
    scf.if %2 {
      %c0_33 = arith.constant 0 : index
      %c0_34 = arith.constant 0 : index
      %90 = vector.load %arg1[%c0_33, %c0_34] : memref<8x32xf32, #tpu.memory_space<vmem>>, vector<8x32xf32>
      %c0_35 = arith.constant 0 : index
      %c0_36 = arith.constant 0 : index
      %91 = vector.load %arg2[%c0_35, %c0_36] : memref<8x96xf32, #tpu.memory_space<vmem>>, vector<8x96xf32>
      %92 = arith.truncf %90 : vector<8x32xf32> to vector<8x32xbf16>
      %c0_37 = arith.constant 0 : index
      %c0_38 = arith.constant 0 : index
      %93 = vector.load %arg7[%c0_37, %c0_38] : memref<32x32xbf16, #tpu.memory_space<vmem>>, vector<32x32xbf16>
      %cst_39 = arith.constant dense<0.000000e+00> : vector<8x32xf32>
      %94 = tpu.matmul %92, %93, %cst_39 {dimension_numbers = #tpu.dot_dimension_numbers<[1], [0], [0], [1], [0, 0, 1, 1], [], []>} : vector<8x32xbf16>, vector<32x32xbf16>, vector<8x32xf32> -> vector<8x32xf32>
      %c0_40 = arith.constant 0 : index
      %c0_41 = arith.constant 0 : index
      %95 = vector.load %arg8[%c0_40, %c0_41] : memref<1x32xf32, #tpu.memory_space<vmem>>, vector<1x32xf32>
      %96 = vector.broadcast %95 : vector<1x32xf32> to vector<8x32xf32>
      %97 = arith.addf %94, %96 : vector<8x32xf32>
      %98 = arith.negf %97 : vector<8x32xf32>
      %99 = math.exp %98 : vector<8x32xf32>
      %cst_42 = arith.constant 1.000000e+00 : f32
      %100 = vector.broadcast %cst_42 : f32 to vector<8x32xf32>
      %101 = arith.addf %100, %99 : vector<8x32xf32>
      %102 = arith.divf %100, %101 : vector<8x32xf32>
      %103 = arith.mulf %97, %102 : vector<8x32xf32>
      %104 = arith.truncf %103 : vector<8x32xf32> to vector<8x32xbf16>
      %c0_43 = arith.constant 0 : index
      %c0_44 = arith.constant 0 : index
      %105 = vector.load %arg9[%c0_43, %c0_44] : memref<32x96xbf16, #tpu.memory_space<vmem>>, vector<32x96xbf16>
      %cst_45 = arith.constant dense<0.000000e+00> : vector<8x96xf32>
      %106 = tpu.matmul %104, %105, %cst_45 {dimension_numbers = #tpu.dot_dimension_numbers<[1], [0], [0], [1], [0, 0, 1, 1], [], []>} : vector<8x32xbf16>, vector<32x96xbf16>, vector<8x96xf32> -> vector<8x96xf32>
      %c0_46 = arith.constant 0 : index
      %c0_47 = arith.constant 0 : index
      %107 = vector.load %arg10[%c0_46, %c0_47] : memref<1x96xf32, #tpu.memory_space<vmem>>, vector<1x96xf32>
      %108 = vector.broadcast %107 : vector<1x96xf32> to vector<8x96xf32>
      %109 = arith.addf %106, %108 : vector<8x96xf32>
      %110 = tpu.concatenate %109, %91 in 1 : vector<8x96xf32>, vector<8x96xf32> -> vector<8x192xf32>
      %111 = arith.truncf %110 : vector<8x192xf32> to vector<8x192xbf16>
      %c0_48 = arith.constant 0 : index
      %c0_49 = arith.constant 0 : index
      %112 = vector.load %arg14[%c0_48, %c0_49] : memref<8x192xbf16, #tpu.memory_space<vmem>>, vector<8x192xbf16>
      tpu.vector_store %arg14[%c0_48, %c0_49], %111 {strides = array<i32>} : memref<8x192xbf16, #tpu.memory_space<vmem>>, vector<8x192xbf16>,
      %113 = tpu.concatenate %90, %91 in 1 : vector<8x32xf32>, vector<8x96xf32> -> vector<8x128xf32>
      %c0_50 = arith.constant 0 : index
      %c0_51 = arith.constant 0 : index
      %114 = vector.load %arg13[%c0_50, %c0_51] : memref<8x128xf32, #tpu.memory_space<vmem>>, vector<8x128xf32>
      tpu.vector_store %arg13[%c0_50, %c0_51], %113 {strides = array<i32>} : memref<8x128xf32, #tpu.memory_space<vmem>>, vector<8x128xf32>,
    } else {
    }
    %c0 = arith.constant 0 : index
    %c0_1 = arith.constant 0 : index
    %3 = vector.load %arg3[%c0, %c0_1] : memref<16x1xf32, #tpu.memory_space<vmem>>, vector<16x1xf32>
    %cst = arith.constant 0.000000e+00 : f32
    %4 = vector.broadcast %cst : f32 to vector<16x1xf32>
    %5 = arith.cmpf ogt, %3, %4 : vector<16x1xf32>
    %6 = tpu.reciprocal %3 {approx = true} : vector<16x1xf32> -> vector<16x1xf32>
    %cst_2 = arith.constant 0.000000e+00 : f32
    %7 = vector.broadcast %cst_2 : f32 to vector<16x1xf32>
    %8 = arith.select %5, %6, %7 : vector<16x1xi1>, vector<16x1xf32>
    %9 = tpu.iota {dimensions = array<i32: 1>} : vector<16x16xi32>
    %c1_i32 = arith.constant 1 : i32
    %10 = vector.broadcast %c1_i32 : i32 to vector<16x16xi32>
    %11 = arith.addi %9, %10 : vector<16x16xi32>
    %12 = arith.sitofp %11 : vector<16x16xi32> to vector<16x16xf32>
    %13 = vector.broadcast %3 : vector<16x1xf32> to vector<16x16xf32>
    %14 = arith.mulf %13, %12 : vector<16x16xf32>
    %cst_3 = arith.constant 0.628318548 : f32
    %15 = vector.broadcast %cst_3 : f32 to vector<16x16xf32>
    %16 = arith.mulf %14, %15 : vector<16x16xf32>
    %17 = math.sin %16 : vector<16x16xf32>
    %18 = vector.broadcast %8 : vector<16x1xf32> to vector<16x16xf32>
    %19 = arith.mulf %17, %18 : vector<16x16xf32>
    %cst_4 = arith.constant 5.000000e+00 : f32
    %20 = vector.broadcast %cst_4 : f32 to vector<16x1xf32>
    %21 = arith.cmpf olt, %3, %20 : vector<16x1xf32>
    %cst_5 = arith.constant 0.628318548 : f32
    %22 = vector.broadcast %cst_5 : f32 to vector<16x1xf32>
    %23 = arith.mulf %3, %22 : vector<16x1xf32>
    %24 = math.cos %23 : vector<16x1xf32>
    %cst_6 = arith.constant 1.000000e+00 : f32
    %25 = vector.broadcast %cst_6 : f32 to vector<16x1xf32>
    %26 = arith.addf %24, %25 : vector<16x1xf32>
    %cst_7 = arith.constant 5.000000e-01 : f32
    %27 = vector.broadcast %cst_7 : f32 to vector<16x1xf32>
    %28 = arith.mulf %27, %26 : vector<16x1xf32>
    %cst_8 = arith.constant 0.000000e+00 : f32
    %29 = vector.broadcast %cst_8 : f32 to vector<16x1xf32>
    %30 = arith.select %21, %28, %29 : vector<16x1xi1>, vector<16x1xf32>
    %31 = arith.truncf %19 : vector<16x16xf32> to vector<16x16xbf16>
    %c0_9 = arith.constant 0 : index
    %c0_10 = arith.constant 0 : index
    %32 = vector.load %arg11[%c0_9, %c0_10] : memref<16x96xbf16, #tpu.memory_space<vmem>>, vector<16x96xbf16>
    %cst_11 = arith.constant dense<0.000000e+00> : vector<16x96xf32>
    %33 = tpu.matmul %31, %32, %cst_11 {dimension_numbers = #tpu.dot_dimension_numbers<[1], [0], [0], [1], [0, 0, 1, 1], [], []>} : vector<16x16xbf16>, vector<16x96xbf16>, vector<16x96xf32> -> vector<16x96xf32>
    %c0_12 = arith.constant 0 : index
    %c0_13 = arith.constant 0 : index
    %34 = vector.load %arg12[%c0_12, %c0_13] : memref<1x96xf32, #tpu.memory_space<vmem>>, vector<1x96xf32>
    %35 = vector.broadcast %34 : vector<1x96xf32> to vector<16x96xf32>
    %36 = arith.addf %33, %35 : vector<16x96xf32>
    %37 = vector.broadcast %30 : vector<16x1xf32> to vector<16x96xf32>
    %38 = arith.mulf %36, %37 : vector<16x96xf32>
    %39 = tpu.iota {dimensions = array<i32: 1>} : vector<16x8xi32>
    %c0_14 = arith.constant 0 : index
    %c0_15 = arith.constant 0 : index
    %40 = vector.load %arg5[%c0_14, %c0_15] : memref<16x1xi32, #tpu.memory_space<vmem>>, vector<16x1xi32>
    %41 = vector.broadcast %40 : vector<16x1xi32> to vector<16x8xi32>
    %42 = arith.cmpi eq, %41, %39 : vector<16x8xi32>
    %43 = arith.extui %42 : vector<16x8xi1> to vector<16x8xi32>
    %44 = arith.sitofp %43 : vector<16x8xi32> to vector<16x8xf32>
    %45 = arith.truncf %44 : vector<16x8xf32> to vector<16x8xbf16>
    %c0_16 = arith.constant 0 : index
    %c0_17 = arith.constant 0 : index
    %46 = vector.load %arg14[%c0_16, %c0_17] : memref<8x192xbf16, #tpu.memory_space<vmem>>, vector<8x192xbf16>
    %cst_18 = arith.constant dense<0.000000e+00> : vector<16x192xf32>
    %47 = tpu.matmul %45, %46, %cst_18 {dimension_numbers = #tpu.dot_dimension_numbers<[1], [0], [0], [1], [0, 0, 1, 1], [], []>} : vector<16x8xbf16>, vector<8x192xbf16>, vector<16x192xf32> -> vector<16x192xf32>
    %48 = vector.extract_strided_slice %47 {offsets = [0, 0], sizes = [16, 96], strides = [1, 1]} : vector<16x192xf32> to vector<16x96xf32>
    %49 = arith.mulf %48, %38 : vector<16x96xf32>
    %50 = vector.extract_strided_slice %49 {offsets = [0, 0], sizes = [16, 32], strides = [1, 1]} : vector<16x96xf32> to vector<16x32xf32>
    %51 = vector.extract_strided_slice %49 {offsets = [0, 32], sizes = [16, 32], strides = [1, 1]} : vector<16x96xf32> to vector<16x32xf32>
    %52 = vector.extract_strided_slice %49 {offsets = [0, 64], sizes = [16, 32], strides = [1, 1]} : vector<16x96xf32> to vector<16x32xf32>
    %c0_19 = arith.constant 0 : index
    %c0_20 = arith.constant 0 : index
    %c0_21 = arith.constant 0 : index
    %53 = vector.load %arg4[%c0_19, %c0_20, %c0_21] : memref<3x16x1xf32, #tpu.memory_space<vmem>>, vector<1x16x1xf32>
    %54 = vector.shape_cast %53 : vector<1x16x1xf32> to vector<16x1xf32>
    %55 = arith.mulf %54, %8 : vector<16x1xf32>
    %56 = vector.extract_strided_slice %47 {offsets = [0, 96], sizes = [16, 32], strides = [1, 1]} : vector<16x192xf32> to vector<16x32xf32>
    %57 = arith.mulf %56, %50 : vector<16x32xf32>
    %58 = vector.broadcast %55 : vector<16x1xf32> to vector<16x32xf32>
    %59 = arith.mulf %58, %51 : vector<16x32xf32>
    %60 = arith.addf %57, %59 : vector<16x32xf32>
    %c1 = arith.constant 1 : index
    %c0_22 = arith.constant 0 : index
    %c0_23 = arith.constant 0 : index
    %61 = vector.load %arg4[%c1, %c0_22, %c0_23] : memref<3x16x1xf32, #tpu.memory_space<vmem>>, vector<1x16x1xf32>
    %62 = vector.shape_cast %61 : vector<1x16x1xf32> to vector<16x1xf32>
    %63 = arith.mulf %62, %8 : vector<16x1xf32>
    %64 = vector.extract_strided_slice %47 {offsets = [0, 128], sizes = [16, 32], strides = [1, 1]} : vector<16x192xf32> to vector<16x32xf32>
    %65 = arith.mulf %64, %50 : vector<16x32xf32>
    %66 = vector.broadcast %63 : vector<16x1xf32> to vector<16x32xf32>
    %67 = arith.mulf %66, %51 : vector<16x32xf32>
    %68 = arith.addf %65, %67 : vector<16x32xf32>
    %c2 = arith.constant 2 : index
    %c0_24 = arith.constant 0 : index
    %c0_25 = arith.constant 0 : index
    %69 = vector.load %arg4[%c2, %c0_24, %c0_25] : memref<3x16x1xf32, #tpu.memory_space<vmem>>, vector<1x16x1xf32>
    %70 = vector.shape_cast %69 : vector<1x16x1xf32> to vector<16x1xf32>
    %71 = arith.mulf %70, %8 : vector<16x1xf32>
    %72 = vector.extract_strided_slice %47 {offsets = [0, 160], sizes = [16, 32], strides = [1, 1]} : vector<16x192xf32> to vector<16x32xf32>
    %73 = arith.mulf %72, %50 : vector<16x32xf32>
    %74 = vector.broadcast %71 : vector<16x1xf32> to vector<16x32xf32>
    %75 = arith.mulf %74, %51 : vector<16x32xf32>
    %76 = arith.addf %73, %75 : vector<16x32xf32>
    %77 = tpu.concatenate %52, %60, %68, %76 in 1 : vector<16x32xf32>, vector<16x32xf32>, vector<16x32xf32>, vector<16x32xf32> -> vector<16x128xf32>
    %78 = arith.truncf %77 : vector<16x128xf32> to vector<16x128xbf16>
    %79 = tpu.iota {dimensions = array<i32: 0>} : vector<8x16xi32>
    %c0_26 = arith.constant 0 : index
    %c0_27 = arith.constant 0 : index
    %80 = vector.load %arg6[%c0_26, %c0_27] : memref<1x16xi32, #tpu.memory_space<vmem>>, vector<1x16xi32>
    %81 = vector.broadcast %80 : vector<1x16xi32> to vector<8x16xi32>
    %82 = arith.cmpi eq, %81, %79 : vector<8x16xi32>
    %83 = arith.extui %82 : vector<8x16xi1> to vector<8x16xi32>
    %84 = arith.sitofp %83 : vector<8x16xi32> to vector<8x16xf32>
    %85 = arith.truncf %84 : vector<8x16xf32> to vector<8x16xbf16>
    %c0_28 = arith.constant 0 : index
    %c0_29 = arith.constant 0 : index
    %86 = vector.load %arg13[%c0_28, %c0_29] : memref<8x128xf32, #tpu.memory_space<vmem>>, vector<8x128xf32>
    %cst_30 = arith.constant dense<0.000000e+00> : vector<8x128xf32>
    %87 = tpu.matmul %85, %78, %cst_30 {dimension_numbers = #tpu.dot_dimension_numbers<[1], [0], [0], [1], [0, 0, 1, 1], [], []>} : vector<8x16xbf16>, vector<16x128xbf16>, vector<8x128xf32> -> vector<8x128xf32>
    %88 = arith.addf %86, %87 : vector<8x128xf32>
    %c0_31 = arith.constant 0 : index
    %c0_32 = arith.constant 0 : index
    %89 = vector.load %arg13[%c0_31, %c0_32] : memref<8x128xf32, #tpu.memory_space<vmem>>, vector<8x128xf32>
    tpu.vector_store %arg13[%c0_31, %c0_32], %88 {strides = array<i32>} : memref<8x128xf32, #tpu.memory_space<vmem>>, vector<8x128xf32>,
    return
  }
  func.func @transform_0(%arg0: i32) -> (i32, i32) {
    %c0_i32 = arith.constant 0 : i32
    %c0_i32_0 = arith.constant 0 : i32
    %c0_i32_1 = arith.constant 0 : i32
    return %c0_i32, %c0_i32_0 : i32, i32
  }
  func.func @transform_1(%arg0: i32) -> (i32, i32) {
    %c0_i32 = arith.constant 0 : i32
    %c0_i32_0 = arith.constant 0 : i32
    %c0_i32_1 = arith.constant 0 : i32
    return %c0_i32, %c0_i32_0 : i32, i32
  }
  func.func @transform_2(%arg0: i32) -> (i32, i32) {
    %c0_i32 = arith.constant 0 : i32
    %c0_i32_0 = arith.constant 0 : i32
    return %arg0, %c0_i32 : i32, i32
  }
  func.func @transform_3(%arg0: i32) -> (i32, i32, i32) {
    %c0_i32 = arith.constant 0 : i32
    %c0_i32_0 = arith.constant 0 : i32
    %c0_i32_1 = arith.constant 0 : i32
    return %c0_i32, %arg0, %c0_i32_0 : i32, i32, i32
  }
  func.func @transform_4(%arg0: i32) -> (i32, i32) {
    %c0_i32 = arith.constant 0 : i32
    %c0_i32_0 = arith.constant 0 : i32
    return %arg0, %c0_i32 : i32, i32
  }
  func.func @transform_5(%arg0: i32) -> (i32, i32) {
    %c0_i32 = arith.constant 0 : i32
    %c0_i32_0 = arith.constant 0 : i32
    return %c0_i32, %arg0 : i32, i32
  }
  func.func @transform_6(%arg0: i32) -> (i32, i32) {
    %c0_i32 = arith.constant 0 : i32
    %c0_i32_0 = arith.constant 0 : i32
    %c0_i32_1 = arith.constant 0 : i32
    return %c0_i32, %c0_i32_0 : i32, i32
  }
  func.func @transform_7(%arg0: i32) -> (i32, i32) {
    %c0_i32 = arith.constant 0 : i32
    %c0_i32_0 = arith.constant 0 : i32
    %c0_i32_1 = arith.constant 0 : i32
    return %c0_i32, %c0_i32_0 : i32, i32
  }
  func.func @transform_8(%arg0: i32) -> (i32, i32) {
    %c0_i32 = arith.constant 0 : i32
    %c0_i32_0 = arith.constant 0 : i32
    %c0_i32_1 = arith.constant 0 : i32
    return %c0_i32, %c0_i32_0 : i32, i32
  }
  func.func @transform_9(%arg0: i32) -> (i32, i32) {
    %c0_i32 = arith.constant 0 : i32
    %c0_i32_0 = arith.constant 0 : i32
    %c0_i32_1 = arith.constant 0 : i32
    return %c0_i32, %c0_i32_0 : i32, i32
  }
  func.func @transform_10(%arg0: i32) -> (i32, i32) {
    %c0_i32 = arith.constant 0 : i32
    %c0_i32_0 = arith.constant 0 : i32
    %c0_i32_1 = arith.constant 0 : i32
    return %c0_i32, %c0_i32_0 : i32, i32
  }
  func.func @transform_11(%arg0: i32) -> (i32, i32) {
    %c0_i32 = arith.constant 0 : i32
    %c0_i32_0 = arith.constant 0 : i32
    %c0_i32_1 = arith.constant 0 : i32
    return %c0_i32, %c0_i32_0 : i32, i32
  }
  func.func @transform_12(%arg0: i32) -> (i32, i32) {
    %c0_i32 = arith.constant 0 : i32
    %c0_i32_0 = arith.constant 0 : i32
    %c0_i32_1 = arith.constant 0 : i32
    return %c0_i32, %c0_i32_0 : i32, i32
  }
}

</mosaic_0001>

<bundles_post_ra>
// kernel: tpu_custom_call.1
= control target key start
LH: loop header
LB: loop body
LE: loop exit
PB: predicated region body
PF: predicated region fallthrough
CT: control target
= control target key end

     0   :  { %v1216_v2 = vmov 0   ;;  %v1217_v3 = vmov 0.0   ;;  %vm1218_vm0 = vmmov 0   ;;  %vm73_vm1 = vcmask 261120   ;;  %s1692_s0 = inlined_call_operand.vmem [shape: f32[8,32], index: 0, kind: input, shape index: {}]   ;;  %s1693_s1 = inlined_call_operand.vmem [shape: f32[8,96], index: 1, kind: input, shape index: {}]   ;;  %s1694_s2 = inlined_call_operand.vmem [shape: f32[16,1], index: 2, kind: input, shape index: {}]   ;;  %s1695_s3 = inlined_call_operand.vmem [shape: f32[3,16,1], index: 3, kind: input, shape index: {}]   ;;  %s1696_s4 = inlined_call_operand.vmem [shape: s32[16,1], index: 4, kind: input, shape index: {}]   ;;  %s1697_s5 = inlined_call_operand.vmem [shape: s32[1,16], index: 5, kind: input, shape index: {}]   ;;  %s1698_s6 = inlined_call_operand.vmem [shape: bf16[32,32], index: 6, kind: input, shape index: {}]   ;;  %s1699_s7 = inlined_call_operand.vmem [shape: f32[1,32], index: 7, kind: input, shape index: {}]   ;;  %s1700_s8 = inlined_call_operand.vmem [shape: bf16[32,96], index: 8, kind: input, shape index: {}]   ;;  %s1701_s9 = inlined_call_operand.vmem [shape: f32[1,96], index: 9, kind: input, shape index: {}]   ;;  %s1702_s10 = inlined_call_operand.vmem [shape: bf16[16,96], index: 10, kind: input, shape index: {}]   ;;  %s1703_s11 = inlined_call_operand.vmem [shape: f32[1,96], index: 11, kind: input, shape index: {}]   ;;  %s1704_s12 = inlined_call_operand.hbm [shape: f32[8,128], index: 12, kind: output, shape index: {}]  }
   0x1   :  { %v1297_v0 = vld [vmem:[%s1694_s2] sm:$0xff]  ;;  %v1161_v1 = vld [vmem:[%s1698_s6 + $0x8] sm:$0xff]   ;;  %1139 = vset.pattern.permute.xlu0 %v1216_v2  ;;  %1082 = vmatprep.subr.bf16.mxu0 %v1217_v3 }
   0x2   :  { %1168 = vrcp.f32 %v1297_v0  ;;  %v1308_v4 = vld [vmem:[%s1694_s2 + $0x8] sm:$0xff]  ;;  %v1162_v5 = vld [vmem:[%s1698_s6] sm:$0xff]   ;;  %228 = vperm.xlu0 %1139, %v1297_v0   ;;  %1083 = vmatpush3.bf16.msra.mxu0 %v1161_v1  ;;  %s1219_s6 = smov 96  }
   0x3   :  { %1170 = vrcp.f32 %v1308_v4  ;;  %v1316_v6 = vmul.f32 0.62831855, %v1308_v4  ;;  %1084 = vmatprep.subr.bf16.mxu0 %v1217_v3  ;;  %v47_v7 = vld [vmem:[%s1692_s0] sm:$0xff]  ;;  %1140 = vset.pattern.permute.xlu1 %v1216_v2 }
   0x4   :  { %v48_v8 = vld [vmem:[%s1693_s1] sm:$0xff]  ;;  %1086 = vmatprep.mubr.msk.bf16.mxu0 %vm1218_vm0, %v1217_v3  ;;  %v49_v10 = vpack.c.bf16 %v47_v7, %v47_v7  ;;  %1090 = vmatprep.subr.bf16.mxu1 %v1217_v3 }
   0x5   :  { %v570_v9 = vand.u32 2139095040, %v1316_v6  ;;  %192 = vrot.lane.b32.xlu1 %v48_v8, %s1219_s6  ;;  %1094 = vmatprep.mubr.msk.bf16.mxu1 %vm1218_vm0, %v1217_v3 }
   0x6   :  { %233 = vperm.xlu0 %1139, %v1308_v4   ;;  %1085 = vmatpush3.bf16.msra.mxu0 %v1162_v5 }
   0x7   :  { %v571_v11 = vshrl.u32 %v570_v9, 23  ;;  %1098 = vmatprep.subr.bf16.mxu0 %v1217_v3 }
   0x9   :  { %v1051_v12 = vadd.s32 4294967169, %v571_v11  ;;  %1087 = vmatmul.mubr.msk.bf16.vlgmr.msra.gmra.mxu0 %vm73_vm1, %v49_v10 }
   0xa   :  { %17 = vsyncpa [#allocation4], 0  ;;  %1100 = vmatprep.mubr.msk.bf16.mxu0 %vm1218_vm0, %v1217_v3  ;;  %vm216_vm3 = vcmp.gt.f32.partialorder %v1297_v0, 0.0  ;;  %vm217_vm4 = vcmp.gt.f32.partialorder %v1308_v4, 0.0  ;;  %v567_v21 = vand.u32 2147483647, %v1316_v6 }
   0xb   :  { %v577_v13 = vadd.s32 1, %v1051_v12  ;;  %v1220_v23 = vmov 2102212464   ;;  %v1221_v25 = vmov 920167782   ;;  %vm569_vm11 = vcmp.lt.s32.totalorder %v1316_v6, 0 }
   0xc   :  { %v574_v27 = vand.u32 8388607, %v567_v21  ;;  %v1222_v28 = vmov 683565275   ;;  %v1223_v30 = vmov 2475754826  }
   0xd   :  { %vm578_vm2 = vcmp.gt.s32.totalorder %v577_v13, 0  ;;  %v1224_v33 = vmov 2131351028   ;;  %v1225_v41 = vmov 1326507024   ;;  %s1226_s17 = smov 32  }
   0xe   :  { %v579_v15 = vsel %vm578_vm2, %v577_v13, 0  ;;  %v575_v38 = vor.u32 8388608, %v574_v27  ;;  %vm568_vm12 = vcmp.le.f32.partialorder %v567_v21, 0.7853982  ;;  %vm659_vm2 = vweird.f32 %v1316_v6  ;;  %s1228_s21 = smov [#allocation3]  }
   0xf   :  { %v1169_v14 = vpop.eup %1168  ;;  %v581_v19 = vand.u32 31, %v579_v15  ;;  %v580_v22 = vshrl.u32 %v579_v15, 5 }
  0x10   :  { %v1171_v16 = vpop.eup %1170  ;;  %v1340_v17 = vsel %vm216_vm3, %v1169_v14, 0.0  ;;  %v615_v46 = vshll.u32 %v575_v38, 8  ;;  %vm461_vm3 = vcmp.lt.f32.partialorder %v1308_v4, 5.0  ;;  %v1065_v4 = vld [vmem:[%s1695_s3 + $0x18] sm:$0xff] }
  0x11   :  { %v1342_v18 = vsel %vm217_vm4, %v1171_v16, 0.0  ;;  %450 = vperm.xlu1 %1140, %v1340_v17   ;;  %v582_v20 = vsub.s32 32, %v581_v19  ;;  %v593_v24 = vshll.u32 %v1220_v23, %v581_v19  ;;  %v584_v29 = vshll.u32 %v1222_v28, %v581_v19 }
  0x12   :  { %455 = vperm.xlu0 %1139, %v1342_v18   ;;  %v587_v32 = vshll.u32 %v1223_v30, %v581_v19  ;;  %v590_v35 = vshll.u32 %v1224_v33, %v581_v19  ;;  %v596_v40 = vshll.u32 %v1221_v25, %v581_v19  ;;  %vm599_vm5 = vcmp.lt.s32.totalorder %v580_v22, 1 }
  0x13   :  { %v594_v26 = vshrl.u32 %v1221_v25, %v582_v20  ;;  %v585_v31 = vshrl.u32 %v1223_v30, %v582_v20  ;;  %v588_v34 = vshrl.u32 %v1224_v33, %v582_v20  ;;  %v591_v36 = vshrl.u32 %v1220_v23, %v582_v20 }
  0x14   :  { %v597_v42 = vshrl.u32 %v1225_v41, %v582_v20  ;;  %vm601_vm6 = vcmp.lt.s32.totalorder %v580_v22, 3  ;;  %vm600_vm7 = vcmp.lt.s32.totalorder %v580_v22, 2  ;;  %vm602_vm8 = vcmp.lt.s32.totalorder %v580_v22, 4 }
  0x15   :  { %v595_v37 = vor.u32 %v594_v26, %v593_v24  ;;  %v586_v39 = vor.u32 %v585_v31, %v584_v29  ;;  %v589_v43 = vor.u32 %v588_v34, %v587_v32  ;;  %v592_v44 = vor.u32 %v591_v36, %v590_v35 }
  0x16   :  { %v598_v45 = vor.u32 %v597_v42, %v596_v40  ;;  %v583_v52 = vshrl.u32 %v1222_v28, %v582_v20  ;;  %v1384_v42 = vmul.f32 0.62831855, %v1297_v0 }
  0x17   :  { %v607_v47 = vsel %vm599_vm5, %v586_v39, %v589_v43  ;;  %v608_v48 = vsel %vm602_vm8, %v595_v37, 920167782  ;;  %v611_v49 = vsel %vm599_vm5, %v589_v43, %v592_v44  ;;  %v604_v55 = vsel %vm602_vm8, %v592_v44, 2102212464 }
  0x18   :  { %v609_v50 = vsel %vm601_vm6, %v592_v44, %v608_v48  ;;  %v612_v51 = vsel %vm602_vm8, %v598_v45, 1326507024  ;;  %v603_v59 = vsel %vm599_vm5, %v583_v52, %v586_v39  ;;  %v605_v60 = vsel %vm601_vm6, %v589_v43, %v604_v55  ;;  %v750_v45 = vld [vmem:[%s1696_s4 + $0x8] sm:$0xff] }
  0x19   :  { %v610_v53 = vsel %vm600_vm7, %v607_v47, %v609_v50  ;;  %v613_v54 = vsel %vm601_vm6, %v595_v37, %v612_v51  ;;  %v606_v63 = vsel %vm600_vm7, %v603_v59, %v605_v60  ;;  %v467_v43 = vand.u32 2139095040, %v1384_v42  ;;  %755 = vperm.xlu0 %1139, %v750_v45   ;;  %v1163_v60 = vld [vmem:[%s1702_s10] sm:$0xff]   ;;  %s1021_s10 = sshll.u32 %s1228_s21, 4  ;;  %s1022_s10 = int_to_ptr.vmem [resolvable:$true] %s1021_s10 }
  0x1a   :  { %v614_v56 = vsel %vm600_vm7, %v611_v49, %v613_v54  ;;  %v1366_v57 = vmul.u32.u64.low %v615_v46, %v610_v53  ;;  %v1367_v58 = vmul.u32.u64.high %v615_v46, %v610_v53, %v1366_v57  ;;  %v622_v1 = vmul.u32 %v615_v46, %v606_v63  ;;  %1099 = vmatpush3.bf16.msra.mxu0 %v1163_v60  ;;  %s1194_s22 = scalar_lea.vmem %s1022_s10, 128  ;;  %p1199_p1 = scmp.lt.s32.totalorder %s1022_s10, %s1022_s10 }
  0x1b   :  { %v1371_v61 = vmul.u32.u64.low %v615_v46, %v614_v56  ;;  %v1372_v62 = vmul.u32.u64.high %v615_v46, %v614_v56, %v1371_v61  ;;  %v468_v47 = vshrl.u32 %v467_v43, 23  ;;  %1104 = vmatprep.subr.bf16.mxu0 %v1217_v3  ;;  %p1195_p0 = scmp.ne.s32.totalorder %s1022_s10, %s1194_s22  ;;  %p1200_p2 = scmp.lt.s32.totalorder %s1194_s22, %s1194_s22 }
  0x1c   :  { %v625_v5 = vadd.s32 1, %v1367_v58 }
  0x1d   :  { %vm624_vm9 = vc.u32 %v1372_v62, %v1366_v57  ;;  %v623_v20 = vadd.s32 %v1366_v57, %v1372_v62  ;;  %v1047_v51 = vadd.s32 4294967169, %v468_v47  ;;  %v827_v62 = vld [vmem:[%s1695_s3 + $0x8] sm:$0xff]  ;;  %p1201_p3 = por %p1200_p2, %p1199_p1 }
  0x1e   :  { %v626_v7 = vsel %vm624_vm9, %v625_v5, %v1367_v58  ;;  %v222_v5 = vlaneseq }
  0x1f   :  { %v627_v8 = vadd.s32 %v626_v7, %v622_v1  ;;  %v474_v56 = vadd.s32 1, %v1047_v51  ;;  %v829_v1 = vmul.f32 %v827_v62, %v1342_v18  ;;  %p1202_p4 = pnand %p1201_p3, %p1195_p0 }
  0x21   :  { %v628_v9 = vadd.s32 536870912, %v627_v8  ;;  %vm475_vm4 = vcmp.gt.s32.totalorder %v474_v56, 0 }
  0x22   :  { %v476_v63 = vsel %vm475_vm4, %v474_v56, 0 }
  0x23   :  { %v629_v10 = vshrl.u32 %v628_v9, 30  ;;  %v478_v7 = vand.u32 31, %v476_v63  ;;  %v1405_v9 = vand.u32 127, %v222_v5 }
  0x25   :  { %v630_v11 = vshll.u32 %v629_v10, 30  ;;  %v653_v44 = vsub.s32 4, %v629_v10 }
  0x27   :  { %v631_v12 = vsub.s32 %v627_v8, %v630_v11  ;;  %v654_v46 = vsel %vm569_vm11, %v653_v44, %v629_v10  ;;  %v866_v8 = vmul.f32 %v1065_v4, %v1342_v18  ;;  %v1067_v10 = vld [vmem:[%s1695_s3 + $0x28] sm:$0xff]  ;;  %v479_v11 = vsub.s32 32, %v478_v7 }
  0x28   :  { %v656_v21 = vsel %vm568_vm12, 0, %v654_v46 }
  0x29   :  { %v633_v13 = vsub.s32 0, %v631_v12  ;;  %v660_v48 = vand.u32 3, %v656_v21  ;;  %v494_v43 = vshrl.u32 %v1225_v41, %v479_v11 }
  0x2b   :  { %v1052_v14 = vmin.u32 %v633_v13, %v631_v12  ;;  %vm665_vm13 = vcmp.eq.s32.totalorder %v660_v48, 2  ;;  %vm662_vm14 = vcmp.eq.s32.totalorder %v660_v48, 0  ;;  %vm661_vm15 = vcmp.lt.s32.totalorder %v660_v48, 2  ;;  %v749_v13 = vld [vmem:[%s1696_s4] sm:$0xff] }
  0x2c   :  { %752 = vperm.xlu1 %1140, %v749_v13  }
  0x2d   :  { %v635_v15 = vclz %v1052_v14  ;;  %v1164_v14 = vld [vmem:[%s1700_s8 + $0x8] sm:$0xff]  }
  0x2e   :  { %1091 = vmatpush3.bf16.msra.mxu1 %v1164_v14 }
  0x2f   :  { %v1053_v16 = vadd.s32 4294967294, %v635_v15  ;;  %v477_v15 = vshrl.u32 %v476_v63, 5  ;;  %1092 = vmatprep.subr.bf16.mxu1 %v1217_v3 }
  0x31   :  { %vm1054_vm10 = vcmp.lt.s32.totalorder %v1053_v16, 0  ;;  %vm496_vm5 = vcmp.lt.s32.totalorder %v477_v15, 1  ;;  %vm497_vm6 = vcmp.lt.s32.totalorder %v477_v15, 2  ;;  %vm498_vm7 = vcmp.lt.s32.totalorder %v477_v15, 3 }
  0x32   :  { %v638_v19 = vsel %vm1054_vm10, 0, %v1053_v16  ;;  %v224_v16 = vadd.s32 1, %v1405_v9  ;;  %vm499_vm8 = vcmp.lt.s32.totalorder %v477_v15, 4 }
  0x33   :  { %v639_v22 = vsub.s32 32, %v638_v19  ;;  %v643_v24 = vsub.s32 4294967266, %v638_v19  ;;  %v640_v26 = vshll.u32 %v631_v12, %v638_v19  ;;  %v895_v12 = vmul.f32 %v1067_v10, %v1342_v18  ;;  %v1165_v19 = vld [vmem:[%s1700_s8] sm:$0xff]  }
  0x34   :  { %v481_v18 = vshll.u32 %v1222_v28, %v478_v7  ;;  %1093 = vmatpush3.bf16.msra.mxu1 %v1165_v19 }
  0x35   :  { %v641_v27 = vshrl.u32 %v623_v20, %v639_v22  ;;  %v644_v29 = vadd.s32 127, %v643_v24  ;;  %v464_v20 = vand.u32 2147483647, %v1384_v42  ;;  %v482_v22 = vshrl.u32 %v1223_v30, %v479_v11 }
  0x36   :  { %v484_v24 = vshll.u32 %v1223_v30, %v478_v7 }
  0x37   :  { %v642_v31 = vor.u32 %v641_v27, %v640_v26  ;;  %v645_v32 = vshll.u32 %v644_v29, 23  ;;  %v485_v26 = vshrl.u32 %v1224_v33, %v479_v11  ;;  %v471_v27 = vand.u32 8388607, %v464_v20 }
  0x38   :  { %v480_v29 = vshrl.u32 %v1222_v28, %v479_v11 }
  0x39   :  { %v646_v34 = vor.u32 4788187, %v645_v32  ;;  %v649_v35 = vcvt.s32.f32 %v642_v31  ;;  %v487_v31 = vshll.u32 %v1224_v33, %v478_v7  ;;  %v488_v32 = vshrl.u32 %v1220_v23, %v479_v11 }
  0x3b   :  { %v647_v36 = vand.u32 2147483647, %v646_v34  ;;  %v483_v34 = vor.u32 %v482_v22, %v481_v18 }
  0x3d   :  { %v650_v37 = vmul.f32 %v649_v35, %v647_v36  ;;  %v486_v35 = vor.u32 %v485_v26, %v484_v24  ;;  %v490_v36 = vshll.u32 %v1220_v23, %v478_v7  ;;  %v500_v46 = vsel %vm496_vm5, %v480_v29, %v483_v34 }
  0x3f   :  { %v651_v38 = vxor.u32 2147483648, %v650_v37  ;;  %v504_v47 = vsel %vm496_vm5, %v483_v34, %v486_v35 }
  0x41   :  { %v652_v39 = vsel %vm569_vm11, %v651_v38, %v650_v37  ;;  %v491_v37 = vshrl.u32 %v1221_v25, %v479_v11  ;;  %v472_v38 = vor.u32 8388608, %v471_v27 }
  0x42   :  { %v655_v40 = vsel %vm568_vm12, %v1316_v6, %v652_v39  ;;  %v489_v39 = vor.u32 %v488_v32, %v487_v31 }
  0x43   :  { %1172 = vcosq.f32 %v655_v40  ;;  %v492_v44 = vor.u32 %v491_v37, %v490_v36 }
  0x44   :  { %1174 = vsinq.f32 %v655_v40  ;;  %v493_v40 = vshll.u32 %v1221_v25, %v478_v7  ;;  %v501_v21 = vsel %vm499_vm8, %v489_v39, 2102212464 }
  0x45   :  { %v505_v48 = vsel %vm499_vm8, %v492_v44, 920167782  ;;  %v502_v51 = vsel %vm498_vm7, %v486_v35, %v501_v21 }
  0x46   :  { %v495_v45 = vor.u32 %v494_v43, %v493_v40 }
  0x50   :  { %v1173_v49 = vpop.eup %1172 }
  0x51   :  { %v1175_v50 = vpop.eup %1174  ;;  %v666_v52 = vxor.u32 2147483648, %v1173_v49 }
  0x52   :  { %v663_v53 = vxor.u32 2147483648, %v1175_v50 }
  0x53   :  { %v667_v54 = vsel %vm665_vm13, %v666_v52, %v1175_v50  ;;  %v512_v50 = vshll.u32 %v472_v38, 8  ;;  %v506_v52 = vsel %vm498_vm7, %v489_v39, %v505_v48 }
  0x54   :  { %v664_v55 = vsel %vm662_vm14, %v1173_v49, %v663_v53  ;;  %v508_v49 = vsel %vm496_vm5, %v486_v35, %v489_v39  ;;  %v509_v53 = vsel %vm499_vm8, %v495_v45, 1326507024 }
  0x55   :  { %v668_v57 = vsel %vm661_vm15, %v664_v55, %v667_v54  ;;  %v225_v54 = vcvt.s32.f32 %v224_v16  ;;  %v507_v55 = vsel %vm497_vm6, %v504_v47, %v506_v52  ;;  %v510_v56 = vsel %vm498_vm7, %v492_v44, %v509_v53 }
  0x56   :  { %v669_v58 = vsel %vm659_vm2, nan, %v668_v57  ;;  %v503_v57 = vsel %vm497_vm6, %v500_v46, %v502_v51 }
  0x57   :  { %v671_v59 = vadd.f32 1.0, %v669_v58  ;;  %v511_v58 = vsel %vm497_vm6, %v508_v49, %v510_v56  ;;  %v519_v63 = vmul.u32 %v512_v50, %v503_v57 }
  0x59   :  { %v673_v61 = vmul.f32 0.5, %v671_v59  ;;  %v1439_v59 = vmul.u32.u64.low %v512_v50, %v507_v55  ;;  %v1440_v60 = vmul.u32.u64.high %v512_v50, %v507_v55, %v1439_v59 }
  0x5b   :  { %v675_v6 = vsel %vm461_vm3, %v673_v61, 0.0  ;;  %v1443_v61 = vmul.u32.u64.low %v512_v50, %v511_v58  ;;  %v1444_v62 = vmul.u32.u64.high %v512_v50, %v511_v58, %v1443_v61  ;;  %v522_v4 = vadd.s32 1, %v1440_v60 }
  0x5c   :  { %744 = vperm.xlu0 %1139, %v675_v6  }
  0x5d   :  { %vm521_vm9 = vc.u32 %v1444_v62, %v1439_v59 }
  0x60   :  { %847 = vperm.xlu0 %1139, %v829_v1  }
  0x64   :  { %876 = vperm.xlu0 %1139, %v866_v8   ;;  %v523_v8 = vsel %vm521_vm9, %v522_v4, %v1440_v60 }
  0x65   :  { %v524_v11 = vadd.s32 %v523_v8, %v519_v63 }
  0x67   :  { %v525_v15 = vadd.s32 536870912, %v524_v11 }
  0x68   :  { %911 = vperm.xlu0 %1139, %v895_v12  }
  0x69   :  { %v1458_v22 = vshrl.u32 %v525_v15, 30 }
  0x6b   :  { %v527_v29 = vshll.u32 %v1458_v22, 30 }
  0x6d   :  { %v1465_v36 = vsub.s32 %v524_v11, %v527_v29 }
  0x6f   :  { %v530_v40 = vsub.s32 0, %v1465_v36 }
  0x71   :  { %v1477_v50 = vmin.u32 %v530_v40, %v1465_v36 }
  0x7d   :  { %v229_v6 = vpop.permute.xlu0 %228 }
  0x7e   :  { %v236_v1 = vmul.f32 %v229_v6, %v225_v54 }
  0x80   :  { %v1449_v7 = vmul.f32 0.62831855, %v236_v1 }
  0x81   :  { %v234_v10 = vpop.permute.xlu0 %233 }
  0x82   :  { %v243_v12 = vand.u32 2139095040, %v1449_v7  ;;  %v237_v13 = vmul.f32 %v234_v10, %v225_v54  ;;  %v240_v14 = vand.u32 2147483647, %v1449_v7 }
  0x84   :  { %v244_v16 = vshrl.u32 %v243_v12, 23  ;;  %v1454_v19 = vmul.f32 0.62831855, %v237_v13  ;;  %v247_v18 = vand.u32 8388607, %v240_v14 }
  0x86   :  { %v1039_v24 = vadd.s32 4294967169, %v244_v16  ;;  %v347_v26 = vand.u32 2139095040, %v1454_v19  ;;  %v344_v27 = vand.u32 2147483647, %v1454_v19  ;;  %v248_v35 = vor.u32 8388608, %v247_v18 }
  0x88   :  { %v250_v31 = vadd.s32 1, %v1039_v24  ;;  %v348_v32 = vshrl.u32 %v347_v26, 23  ;;  %v351_v34 = vand.u32 8388607, %v344_v27  ;;  %v1472_v47 = vshll.u32 %v248_v35, 8 }
  0x8a   :  { %vm251_vm10 = vcmp.gt.s32.totalorder %v250_v31, 0  ;;  %v1043_v37 = vadd.s32 4294967169, %v348_v32  ;;  %v352_v38 = vor.u32 8388608, %v351_v34 }
  0x8b   :  { %v252_v39 = vsel %vm251_vm10, %v250_v31, 0  ;;  %vm466_vm10 = vcmp.lt.s32.totalorder %v1384_v42, 0 }
  0x8c   :  { %v1468_v43 = vshrl.u32 %v252_v39, 5  ;;  %v254_v44 = vand.u32 31, %v252_v39  ;;  %v354_v45 = vadd.s32 1, %v1043_v37  ;;  %v1470_v46 = vshll.u32 %v352_v38, 8 }
  0x8e   :  { %v255_v21 = vsub.s32 32, %v254_v44  ;;  %v266_v48 = vshll.u32 %v1220_v23, %v254_v44  ;;  %v269_v49 = vshll.u32 %v1221_v25, %v254_v44  ;;  %vm275_vm11 = vcmp.lt.s32.totalorder %v1468_v43, 4 }
  0x8f   :  { %vm355_vm12 = vcmp.gt.s32.totalorder %v354_v45, 0  ;;  %v257_v51 = vshll.u32 %v1222_v28, %v254_v44  ;;  %v260_v52 = vshll.u32 %v1223_v30, %v254_v44  ;;  %v263_v56 = vshll.u32 %v1224_v33, %v254_v44 }
  0x90   :  { %v267_v53 = vshrl.u32 %v1221_v25, %v255_v21  ;;  %v270_v54 = vshrl.u32 %v1225_v41, %v255_v21  ;;  %v356_v55 = vsel %vm355_vm12, %v354_v45, 0  ;;  %v256_v60 = vshrl.u32 %v1222_v28, %v255_v21 }
  0x91   :  { %v357_v57 = vshrl.u32 %v356_v55, 5  ;;  %v358_v58 = vand.u32 31, %v356_v55  ;;  %v258_v61 = vshrl.u32 %v1223_v30, %v255_v21  ;;  %v261_v1 = vshrl.u32 %v1224_v33, %v255_v21 }
  0x92   :  { %v268_v6 = vor.u32 %v267_v53, %v266_v48  ;;  %v271_v63 = vor.u32 %v270_v54, %v269_v49  ;;  %v264_v4 = vshrl.u32 %v1220_v23, %v255_v21  ;;  %vm272_vm14 = vcmp.lt.s32.totalorder %v1468_v43, 1 }
  0x93   :  { %v359_v8 = vsub.s32 32, %v358_v58  ;;  %v370_v10 = vshll.u32 %v1220_v23, %v358_v58  ;;  %v373_v11 = vshll.u32 %v1221_v25, %v358_v58  ;;  %vm379_vm13 = vcmp.lt.s32.totalorder %v357_v57, 4 }
  0x94   :  { %v281_v12 = vsel %vm275_vm11, %v268_v6, 920167782  ;;  %v285_v13 = vsel %vm275_vm11, %v271_v63, 1326507024  ;;  %v361_v15 = vshll.u32 %v1222_v28, %v358_v58  ;;  %v364_v16 = vshll.u32 %v1223_v30, %v358_v58 }
  0x95   :  { %v371_v18 = vshrl.u32 %v1221_v25, %v359_v8  ;;  %v374_v24 = vshrl.u32 %v1225_v41, %v359_v8  ;;  %v360_v26 = vshrl.u32 %v1222_v28, %v359_v8  ;;  %v362_v29 = vshrl.u32 %v1223_v30, %v359_v8 }
  0x96   :  { %v365_v31 = vshrl.u32 %v1224_v33, %v359_v8  ;;  %v367_v32 = vshll.u32 %v1224_v33, %v358_v58  ;;  %v368_v34 = vshrl.u32 %v1220_v23, %v359_v8  ;;  %vm376_vm15 = vcmp.lt.s32.totalorder %v357_v57, 1 }
  0x97   :  { %v372_v35 = vor.u32 %v371_v18, %v370_v10  ;;  %v375_v37 = vor.u32 %v374_v24, %v373_v11  ;;  %v363_v38 = vor.u32 %v362_v29, %v361_v15  ;;  %vm377_vm2 = vcmp.lt.s32.totalorder %v357_v57, 2 }
  0x98   :  { %v366_v39 = vor.u32 %v365_v31, %v364_v16  ;;  %v369_v40 = vor.u32 %v368_v34, %v367_v32  ;;  %vm378_vm3 = vcmp.lt.s32.totalorder %v357_v57, 3  ;;  %v259_v25 = vor.u32 %v258_v61, %v257_v51 }
  0x99   :  { %v385_v41 = vsel %vm379_vm13, %v372_v35, 920167782  ;;  %v389_v28 = vsel %vm379_vm13, %v375_v37, 1326507024  ;;  %v380_v30 = vsel %vm376_vm15, %v360_v26, %v363_v38  ;;  %v262_v44 = vor.u32 %v261_v1, %v260_v52 }
  0x9a   :  { %v381_v33 = vsel %vm379_vm13, %v369_v40, 2102212464  ;;  %v384_v23 = vsel %vm376_vm15, %v363_v38, %v366_v39  ;;  %v386_v45 = vsel %vm378_vm3, %v369_v40, %v385_v41  ;;  %v388_v21 = vsel %vm376_vm15, %v366_v39, %v369_v40 }
  0x9b   :  { %v382_v48 = vsel %vm378_vm3, %v366_v39, %v381_v33  ;;  %v387_v49 = vsel %vm377_vm2, %v384_v23, %v386_v45  ;;  %v390_v53 = vsel %vm378_vm3, %v372_v35, %v389_v28  ;;  %v265_v54 = vor.u32 %v264_v4, %v263_v56 }
  0x9c   :  { %v383_v51 = vsel %vm377_vm2, %v380_v30, %v382_v48  ;;  %v391_v55 = vsel %vm377_vm2, %v388_v21, %v390_v53  ;;  %v1515_v58 = vmul.u32.u64.low %v1470_v46, %v387_v49  ;;  %v1516_v61 = vmul.u32.u64.high %v1470_v46, %v387_v49, %v1515_v58 }
  0x9d   :  { %v1519_v52 = vmul.u32.u64.low %v1470_v46, %v391_v55  ;;  %v1520_v63 = vmul.u32.u64.high %v1470_v46, %v391_v55, %v1519_v52  ;;  %v399_v1 = vmul.u32 %v1470_v46, %v383_v51  ;;  %vm273_vm4 = vcmp.lt.s32.totalorder %v1468_v43, 2 }
  0x9e   :  { %vm274_vm5 = vcmp.lt.s32.totalorder %v1468_v43, 3  ;;  %v276_v56 = vsel %vm272_vm14, %v256_v60, %v259_v25  ;;  %v277_v57 = vsel %vm275_vm11, %v265_v54, 2102212464  ;;  %v280_v4 = vsel %vm272_vm14, %v259_v25, %v262_v44 }
  0x9f   :  { %v278_v8 = vsel %vm274_vm5, %v262_v44, %v277_v57  ;;  %v282_v10 = vsel %vm274_vm5, %v265_v54, %v281_v12  ;;  %v284_v11 = vsel %vm272_vm14, %v262_v44, %v265_v54  ;;  %v286_v15 = vsel %vm274_vm5, %v268_v6, %v285_v13 }
  0xa0   :  { %v402_v46 = vadd.s32 1, %v1516_v61  ;;  %v283_v16 = vsel %vm273_vm4, %v280_v4, %v282_v10  ;;  %v287_v60 = vsel %vm273_vm4, %v284_v11, %v286_v15  ;;  %vm401_vm6 = vc.u32 %v1520_v63, %v1515_v58 }
  0xa1   :  { %v1540_v18 = vmul.u32.u64.low %v1472_v47, %v287_v60  ;;  %v1541_v24 = vmul.u32.u64.high %v1472_v47, %v287_v60, %v1540_v18  ;;  %v279_v26 = vsel %vm273_vm4, %v276_v56, %v278_v8  ;;  %v532_v31 = vclz %v1477_v50 }
  0xa2   :  { %v403_v12 = vsel %vm401_vm6, %v402_v46, %v1516_v61  ;;  %v1547_v6 = vmul.u32.u64.low %v1472_v47, %v283_v16  ;;  %v1548_v13 = vmul.u32.u64.high %v1472_v47, %v283_v16, %v1547_v6  ;;  %v295_v34 = vmul.u32 %v1472_v47, %v279_v26 }
  0xa3   :  { %v404_v29 = vadd.s32 %v403_v12, %v399_v1  ;;  %v1049_v35 = vadd.s32 4294967294, %v532_v31  ;;  %v520_v43 = vadd.s32 %v1439_v59, %v1444_v62  ;;  %v400_v56 = vadd.s32 %v1515_v58, %v1520_v63 }
  0xa4   :  { %vm297_vm7 = vc.u32 %v1541_v24, %v1547_v6  ;;  %v298_v37 = vadd.s32 1, %v1548_v13  ;;  %vm1568_vm11 = vcmp.le.f32.partialorder %v464_v20, 0.7853982  ;;  %v550_v12 = vsub.s32 4, %v1458_v22 }
  0xa5   :  { %v405_v32 = vadd.s32 536870912, %v404_v29  ;;  %vm1050_vm8 = vcmp.lt.s32.totalorder %v1049_v35, 0  ;;  %v296_v20 = vadd.s32 %v1547_v6, %v1541_v24  ;;  %vm346_vm13 = vcmp.lt.s32.totalorder %v1454_v19, 0 }
  0xa6   :  { %v299_v39 = vsel %vm297_vm7, %v298_v37, %v1548_v13  ;;  %v535_v40 = vsel %vm1050_vm8, 0, %v1049_v35  ;;  %vm1588_vm14 = vcmp.le.f32.partialorder %v344_v27, 0.7853982  ;;  %vm242_vm15 = vcmp.lt.s32.totalorder %v1449_v7, 0 }
  0xa7   :  { %v1554_v38 = vshrl.u32 %v405_v32, 30  ;;  %v300_v50 = vadd.s32 %v299_v39, %v295_v34  ;;  %v536_v41 = vsub.s32 32, %v535_v40  ;;  %v537_v47 = vshll.u32 %v1465_v36, %v535_v40 }
  0xa8   :  { %v540_v28 = vsub.s32 4294967266, %v535_v40  ;;  %v551_v39 = vsel %vm466_vm10, %v550_v12, %v1458_v22  ;;  %vm1602_vm2 = vcmp.le.f32.partialorder %v240_v14, 0.7853982  ;;  %vm556_vm6 = vweird.f32 %v1384_v42 }
  0xa9   :  { %v407_v25 = vshll.u32 %v1554_v38, 30  ;;  %v301_v44 = vadd.s32 536870912, %v300_v50  ;;  %v538_v33 = vshrl.u32 %v520_v43, %v536_v41  ;;  %v430_v24 = vsub.s32 4, %v1554_v38 }
  0xaa   :  { %v541_v23 = vadd.s32 127, %v540_v28  ;;  %vm460_vm7 = vcmp.lt.f32.partialorder %v1297_v0, 5.0 }
  0xab   :  { %v408_v30 = vsub.s32 %v404_v29, %v407_v25  ;;  %v1561_v21 = vshrl.u32 %v301_v44, 30  ;;  %v539_v48 = vor.u32 %v538_v33, %v537_v47  ;;  %v553_v47 = vsel %vm1568_vm11, 0, %v551_v39 }
  0xac   :  { %v542_v59 = vshll.u32 %v541_v23, 23  ;;  %v557_v23 = vand.u32 3, %v553_v47 }
  0xad   :  { %v410_v45 = vsub.s32 0, %v408_v30  ;;  %v303_v49 = vshll.u32 %v1561_v21, 30  ;;  %v546_v54 = vcvt.s32.f32 %v539_v48  ;;  %v431_v48 = vsel %vm346_vm13, %v430_v24, %v1554_v38 }
  0xae   :  { %v543_v53 = vor.u32 4788187, %v542_v59  ;;  %vm562_vm3 = vcmp.eq.s32.totalorder %v557_v23, 2  ;;  %vm558_vm4 = vcmp.lt.s32.totalorder %v557_v23, 2  ;;  %vm559_vm5 = vcmp.eq.s32.totalorder %v557_v23, 0 }
  0xaf   :  { %v1044_v62 = vmin.u32 %v410_v45, %v408_v30  ;;  %v304_v55 = vsub.s32 %v300_v50, %v303_v49  ;;  %v1029_v49 = vld [vmem:[%s1699_s7] ss:$0 sm:$0xff] }
  0xb0   :  { %v544_v61 = vand.u32 2147483647, %v543_v53 }
  0xb1   :  { %v412_v51 = vclz %v1044_v62  ;;  %v306_v36 = vsub.s32 0, %v304_v55 }
  0xb2   :  { %v547_v1 = vmul.f32 %v546_v54, %v544_v61 }
  0xb3   :  { %v1045_v52 = vadd.s32 4294967294, %v412_v51  ;;  %v1040_v4 = vmin.u32 %v306_v36, %v304_v55 }
  0xb4   :  { %v548_v8 = vxor.u32 2147483648, %v547_v1 }
  0xb5   :  { %vm1046_vm9 = vcmp.lt.s32.totalorder %v1045_v52, 0  ;;  %v308_v16 = vclz %v1040_v4 }
  0xb6   :  { %v415_v57 = vsel %vm1046_vm9, 0, %v1045_v52  ;;  %v549_v58 = vsel %vm466_vm10, %v548_v8, %v547_v1  ;;  %v326_v1 = vsub.s32 4, %v1561_v21 }
  0xb7   :  { %v416_v10 = vsub.s32 32, %v415_v57  ;;  %v417_v11 = vshll.u32 %v408_v30, %v415_v57  ;;  %v420_v15 = vsub.s32 4294967266, %v415_v57  ;;  %v1041_v63 = vadd.s32 4294967294, %v308_v16 }
  0xb8   :  { %v552_v26 = vsel %vm1568_vm11, %v1384_v42, %v549_v58  ;;  %v327_v42 = vsel %vm242_vm15, %v326_v1, %v1561_v21  ;;  %vm436_vm11 = vweird.f32 %v1454_v19 }
  0xb9   :  { %v418_v60 = vshrl.u32 %v400_v56, %v416_v10  ;;  %v421_v18 = vadd.s32 127, %v420_v15  ;;  %1176 = vcosq.f32 %v552_v26  ;;  %vm1042_vm12 = vcmp.lt.s32.totalorder %v1041_v63, 0 }
  0xba   :  { %1178 = vsinq.f32 %v552_v26  ;;  %v311_v34 = vsel %vm1042_vm12, 0, %v1041_v63  ;;  %v329_v12 = vsel %vm1602_vm2, 0, %v327_v42 }
  0xbb   :  { %v419_v13 = vor.u32 %v418_v60, %v417_v11  ;;  %v422_v29 = vshll.u32 %v421_v18, 23  ;;  %v312_v35 = vsub.s32 32, %v311_v34  ;;  %v313_v37 = vshll.u32 %v304_v55, %v311_v34 }
  0xbc   :  { %v316_v43 = vsub.s32 4294967266, %v311_v34  ;;  %v433_v55 = vsel %vm1588_vm14, 0, %v431_v48 }
  0xbd   :  { %v423_v31 = vor.u32 4788187, %v422_v29  ;;  %v426_v32 = vcvt.s32.f32 %v419_v13  ;;  %v314_v25 = vshrl.u32 %v296_v20, %v312_v35  ;;  %v437_v15 = vadd.s32 3, %v433_v55  ;;  %v826_v13 = vld [vmem:[%s1695_s3] sm:$0xff] }
  0xbe   :  { %v317_v50 = vadd.s32 127, %v316_v43  ;;  %v828_v21 = vmul.f32 %v826_v13, %v1340_v17 }
  0xbf   :  { %v424_v40 = vand.u32 2147483647, %v423_v31  ;;  %v315_v6 = vor.u32 %v314_v25, %v313_v37  ;;  %v438_v63 = vand.u32 3, %v437_v15  ;;  %v333_v31 = vadd.s32 3, %v329_v12  ;;  %v1066_v25 = vld [vmem:[%s1695_s3 + $0x20] sm:$0xff] }
  0xc0   :  { %v318_v28 = vshll.u32 %v317_v50, 23  ;;  %v193_v50 = vpop.permute.xlu1 %192 }
  0xc1   :  { %v427_v41 = vmul.f32 %v426_v32, %v424_v40  ;;  %v322_v33 = vcvt.s32.f32 %v315_v6  ;;  %v1064_v32 = vld [vmem:[%s1695_s3 + $0x10] sm:$0xff]  ;;  %vm440_vm8 = vcmp.eq.s32.totalorder %v438_v63, 0  ;;  %vm443_vm9 = vcmp.eq.s32.totalorder %v438_v63, 2 }
  0xc2   :  { %v319_v44 = vor.u32 4788187, %v318_v28  ;;  %v865_v37 = vmul.f32 %v1064_v32, %v1340_v17  ;;  %vm439_vm10 = vcmp.lt.s32.totalorder %v438_v63, 2  ;;  %v334_v40 = vand.u32 3, %v333_v31 }
  0xc3   :  { %v428_v22 = vxor.u32 2147483648, %v427_v41  ;;  %v894_v28 = vmul.f32 %v1066_v25, %v1340_v17 }
  0xc4   :  { %v320_v62 = vand.u32 2147483647, %v319_v44  ;;  %vm339_vm12 = vcmp.eq.s32.totalorder %v334_v40, 2 }
  0xc5   :  { %v429_v45 = vsel %vm346_vm13, %v428_v22, %v427_v41  ;;  %vm336_vm13 = vcmp.eq.s32.totalorder %v334_v40, 0 }
  0xc6   :  { %v432_v59 = vsel %vm1588_vm14, %v1454_v19, %v429_v45  ;;  %v1177_v27 = vpop.eup %1176  ;;  %v323_v38 = vmul.f32 %v322_v33, %v320_v62  ;;  %v456_v33 = vpop.permute.xlu0 %455  ;;  %vm335_vm14 = vcmp.lt.s32.totalorder %v334_v40, 2 }
  0xc7   :  { %1180 = vcosq.f32 %v432_v59  ;;  %v1179_v54 = vpop.eup %1178  ;;  %v563_v61 = vxor.u32 2147483648, %v1177_v27  ;;  %v451_v19 = vpop.permute.xlu1 %450 }
  0xc8   :  { %1182 = vsinq.f32 %v432_v59  ;;  %v324_v36 = vxor.u32 2147483648, %v323_v38  ;;  %v560_v56 = vxor.u32 2147483648, %v1179_v54 }
  0xc9   :  { %v111_v51 = vpop.f32.mrf.mxu0  ;;  %v564_v57 = vsel %vm562_vm3, %v563_v61, %v1179_v54  ;;  %vm195_vm3 = vcmask 785408  }
  0xca   :  { %v1608_v52 = vadd.f32 %v1029_v49, %v111_v51  ;;  %v325_v8 = vsel %vm242_vm15, %v324_v36, %v323_v38  ;;  %v561_v10 = vsel %vm559_vm5, %v1177_v27, %v560_v56  ;;  %vm332_vm15 = vweird.f32 %v1449_v7  ;;  %v1034_v36 = vld [vmem:[%s1701_s9] ss:$0 sm:$0xff] }
  0xcb   :  { %v1088_v14 = vpop.f32.mrf.mxu0  ;;  %v328_v46 = vsel %vm1602_vm2, %v1449_v7, %v325_v8  ;;  %v565_v16 = vsel %vm558_vm4, %v561_v10, %v564_v57  ;;  %vm692_vm2 = vcmask 130048   ;;  %vm205_vm4 = vcmask 1043456   ;;  %v753_v8 = vpop.permute.xlu1 %752 }
  0xcc   :  { %v1033_v4 = vmul.f32 -1.442695, %v1608_v52  ;;  %v566_v60 = vsel %vm556_vm6, nan, %v565_v16  ;;  %v756_v10 = vpop.permute.xlu0 %755 }
  0xcd   :  { %v114_v11 = vpop.f32.mrf.mxu0  ;;  %v670_v58 = vadd.f32 1.0, %v566_v60  ;;  %vm758_vm6 = vcmp.eq.s32.totalorder %v756_v10, %v1405_v9 }
  0xce   :  { %1184 = vpow2.f32 %v1033_v4  ;;  %v1059_v16 = vsel %vm758_vm6, 1.0, %v1217_v3 }
  0xcf   :  { %v1089_v18 = vpop.f32.mrf.mxu0  ;;  %1186 = vcosq.f32 %v328_v46  ;;  %v672_v26 = vmul.f32 0.5, %v670_v58  ;;  %v1055_v58 = vld [vmem:[%s1703_s11] ss:$0 sm:$0xff]  ;;  %s1227_s11 = smov 64  }
  0xd0   :  { %1188 = vsinq.f32 %v328_v46 }
  0xd1   :  { %v674_v29 = vsel %vm460_vm7, %v672_v26, 0.0  ;;  %vm757_vm7 = vcmp.eq.s32.totalorder %v753_v8, %v1405_v9  ;;  %v1068_v8 = vld [vmem:[%s1697_s5] ss:$0 sm:$0xff] }
  0xd2   :  { %739 = vperm.xlu1 %1140, %v674_v29   ;;  %v1058_v42 = vsel %vm757_vm7, 1.0, %v1217_v3 }
  0xd3   :  { %v763_v18 = vpack.c.bf16 %v1059_v16, %v1058_v42 }
  0xd4   :  { %v1181_v20 = vpop.eup %1180 }
  0xd5   :  { %v1183_v0 = vpop.eup %1182  ;;  %v444_v34 = vxor.u32 2147483648, %v1181_v20 }
  0xd6   :  { %v441_v35 = vxor.u32 2147483648, %v1183_v0  ;;  %842 = vperm.xlu1 %1140, %v828_v21  }
  0xd7   :  { %v445_v39 = vsel %vm443_vm9, %v444_v34, %v1183_v0  ;;  %vm951_vm9 = vcmask 523264  }
  0xd8   :  { %v442_v43 = vsel %vm440_vm8, %v1181_v20, %v441_v35  ;;  %vm770_vm8 = vcmask 64512   ;;  %v745_v20 = vpop.permute.xlu0 %744 }
  0xd9   :  { %v446_v47 = vsel %vm439_vm10, %v442_v43, %v445_v39 }
  0xda   :  { %871 = vperm.xlu1 %1140, %v865_v37   ;;  %v447_v44 = vsel %vm436_vm11, nan, %v446_v47 }
  0xdb   :  { %v1185_v41 = vpop.eup %1184  ;;  %v459_v59 = vmul.f32 %v456_v33, %v447_v44 }
  0xdc   :  { %v1187_v24 = vpop.eup %1186  ;;  %v120_v6 = vadd.f32 1.0, %v1185_v41  ;;  %v848_v43 = vpop.permute.xlu0 %847 }
  0xdd   :  { %v1189_v30 = vpop.eup %1188  ;;  %v340_v22 = vxor.u32 2147483648, %v1187_v24 }
  0xde   :  { %1190 = vrcp.f32 %v120_v6  ;;  %v337_v23 = vxor.u32 2147483648, %v1189_v30  ;;  %906 = vperm.xlu1 %1140, %v894_v28  }
  0xdf   :  { %v341_v45 = vsel %vm339_vm12, %v340_v22, %v1189_v30 }
  0xe0   :  { %v338_v48 = vsel %vm336_vm13, %v1187_v24, %v337_v23 }
  0xe1   :  { %v342_v62 = vsel %vm335_vm14, %v338_v48, %v341_v45 }
  0xe2   :  { %v343_v49 = vsel %vm332_vm15, nan, %v342_v62 }
  0xe3   :  { %v458_v27 = vmul.f32 %v451_v19, %v343_v49 }
  0xe5   :  { %v676_v17 = vpack.c.bf16 %v459_v59, %v458_v27 }
  0xe7   :  { %1101 = vmatmul.mubr.msk.bf16.vlgmr.msra.gmra.mxu0 %vm692_vm2, %v676_v17 }
  0xe8   :  { %1106 = vmatprep.mubr.msk.bf16.mxu0 %vm1218_vm0, %v1217_v3  ;;  %vm206_vm0 = vcmask 523268  }
  0xe9   :  { %vm207_vm5 = vmor %vm206_vm0, %vm205_vm4 }
  0xeb   :  { %v1191_v53 = vpop.eup %1190 }
  0xec   :  { %v123_v38 = vmul.f32 %v1191_v53, %v1608_v52 }
  0xee   :  { %v124_v54 = vpack.c.bf16 %v123_v38, %v123_v38 }
  0xf0   :  { %1095 = vmatmul.mubr.msk.bf16.vlgmr.msra.gmra.mxu1 %vm73_vm1, %v124_v54 }
  0xf1   :  { %813 = vmatprep.mubr.bf16.mxu1 %v1216_v2 }
 0x14d   :  { %v740_v63 = vpop.permute.xlu1 %739 }
 0x151   :  { %v843_v34 = vpop.permute.xlu1 %842 }
 0x155   :  { %v872_v39 = vpop.permute.xlu1 %871 }
 0x159   :  { %v907_v47 = vpop.permute.xlu1 %906 }
 0x1a7   :  { %v730_v7 = vpop.f32.mrf.mxu0 }
 0x1a8   :  { %v731_v9 = vadd.f32 %v1055_v58, %v730_v7 }
 0x1a9   :  { %v1102_v51 = vpop.f32.mrf.mxu0 }
 0x1aa   :  { %v747_v26 = vmul.f32 %v740_v63, %v731_v9 }
 0x1ab   :  { %v733_v55 = vpop.f32.mrf.mxu0 }
 0x1ac   :  { %v734_v12 = vadd.f32 %v1055_v58, %v733_v55 }
 0x1ad   :  { %v1103_v61 = vpop.f32.mrf.mxu0 }
 0x1ae   :  { %v748_v21 = vmul.f32 %v745_v20, %v734_v12 }
 0x1b0   :  { %v185_v1 = vpop.f32.mrf.mxu1 }
 0x1b1   :  { %v186_v56 = vadd.f32 %v1034_v36, %v185_v1 }
 0x1b2   :  { %v1096_v14 = vpop.f32.mrf.mxu1 }
 0x1b3   :  { %v196_v52 = vsel %vm195_vm3, %v186_v56, %v193_v50 }
 0x1b4   :  { %v1071_v57 = vpack.c.bf16 %v193_v50, %v196_v52  ;;  %v188_v2 = vpop.f32.mrf.mxu1  ;;  %v877_v50 = vpop.permute.xlu0 %876  ;;  %v1192_v52 = vld [vmem:[%s1693_s1] sm:$0xff] }
 0x1b6   :  { %v1097_v4 = vpop.f32.mrf.mxu1  ;;  %208 = vst.msk [vmem:[#allocation2] sm:$0xff] %vm207_vm5, %v1071_v57  ;;  %v959_v57 = vshrl.u32 %v222_v5, 7 }
 0x1b8   :  { %v912_v24 = vpop.permute.xlu0 %911  ;;  %vm965_vm10 = vcmp.eq.s32.totalorder %v1068_v8, %v959_v57 }
 0x1bd   :  { %v764_v11 = vld [vmem:[#allocation2] sm:$0xff] }
 0x1be   :  { %v1061_v15 = vcombine.high %v764_v11, %v764_v11  ;;  %v1060_v46 = vcombine.low %v764_v11, %v764_v11 }
 0x1c0   :  { %1062 = vmatprep.subr.msk.bf16.mxu1 %vm205_vm4, %v1061_v15  ;;  %v776_v60 = vsel %vm205_vm4, %v1060_v46, 0 }
 0x1c1   :  { %796 = vmatpush1.bf16.msra.mxu1 %v776_v60 }
 0x1c4   :  { %1063 = vmatmul.mubr.msk.bf16.vlgmr.msra.gmra.mxu1 %vm770_vm8, %v763_v18 }
 0x284   :  { %v815_v13 = vpop.f32.mrf.mxu1 }
 0x285   :  { %v824_v29 = vmul.f32 %v815_v13, %v747_v26 }
 0x286   :  { %v817_v31 = vpop.f32.mrf.mxu1 }
 0x287   :  { %832 = vrot.lane.b32.xlu1 %v824_v29, %s1219_s6  ;;  %v850_v37 = vmul.f32 %v843_v34, %v824_v29  ;;  %v879_v40 = vmul.f32 %v872_v39, %v824_v29  ;;  %v914_v45 = vmul.f32 %v907_v47, %v824_v29  ;;  %v867_v51 = vmul.f32 %v824_v29, %v817_v31 }
 0x288   :  { %v819_v32 = vpop.f32.mrf.mxu1 }
 0x289   :  { %v825_v0 = vmul.f32 %v819_v32, %v748_v21 }
 0x28a   :  { %v821_v22 = vpop.f32.mrf.mxu1 }
 0x28b   :  { %896 = vrot.lane.b32.xlu1 %v824_v29, %s1226_s17  ;;  %834 = vrot.lane.b32.xlu0 %v825_v0, %s1219_s6  ;;  %v1141_v35 = vpack.i.bf16 %v825_v0, %v824_v29  ;;  %v851_v25 = vmul.f32 %v848_v43, %v825_v0  ;;  %v880_v41 = vmul.f32 %v877_v50, %v825_v0 }
 0x28c   :  { %v915_v19 = vmul.f32 %v912_v24, %v825_v0  ;;  %v868_v55 = vmul.f32 %v825_v0, %v821_v22 }
 0x28f   :  { %854 = vrot.lane.b32.xlu1 %v850_v37, %s1227_s11  ;;  %898 = vrot.lane.b32.xlu0 %v825_v0, %s1226_s17  ;;  %v1193_v0 = vld [vmem:[%s1692_s0] sm:$0xff] }
 0x293   :  { %883 = vrot.lane.b32.xlu1 %v879_v40, %s1219_s6  ;;  %856 = vrot.lane.b32.xlu0 %v851_v25, %s1227_s11 }
 0x297   :  { %1142 = vrot.lane.b32.xlu1 %v1141_v35, %s1227_s11  ;;  %885 = vrot.lane.b32.xlu0 %v880_v41, %s1219_s6 }
 0x2f9   :  { %v833_v6 = vpop.permute.xlu1 %832 }
 0x2fa   :  { %v838_v59 = vmul.f32 %v833_v6, %v815_v13  ;;  %v1069_v13 = vsel %vm965_vm10, 1.0, %v1217_v3 }
 0x2fb   :  { %v968_v21 = vpack.c.bf16 %v1069_v13, %v1069_v13 }
 0x2fd   :  { %v897_v28 = vpop.permute.xlu1 %896  ;;  %v835_v30 = vpop.permute.xlu0 %834 }
 0x2fe   :  { %v902_v44 = vmul.f32 %v897_v28, %v817_v31  ;;  %v839_v49 = vmul.f32 %v835_v30, %v819_v32 }
 0x300   :  { %v916_v62 = vadd.f32 %v914_v45, %v902_v44 }
 0x301   :  { %v855_v33 = vpop.permute.xlu1 %854  ;;  %v899_v23 = vpop.permute.xlu0 %898 }
 0x302   :  { %v903_v48 = vmul.f32 %v899_v23, %v821_v22  ;;  %v860_v53 = vadd.f32 %v855_v33, %v838_v59 }
 0x304   :  { %v917_v27 = vadd.f32 %v915_v19, %v903_v48 }
 0x305   :  { %v857_v17 = vpop.permute.xlu0 %856  ;;  %v884_v7 = vpop.permute.xlu1 %883 }
 0x306   :  { %v861_v38 = vadd.f32 %v857_v17, %v839_v49  ;;  %v1156_v54 = vpack.i.bf16 %v917_v27, %v916_v62  ;;  %v889_v1 = vadd.f32 %v884_v7, %v867_v51 }
 0x308   :  { %v1146_v61 = vpack.i.bf16 %v861_v38, %v860_v53 }
 0x309   :  { %v886_v36 = vpop.permute.xlu0 %885  ;;  %v1143_v2 = vpop.permute.xlu1 %1142 }
 0x30a   :  { %v890_v56 = vadd.f32 %v886_v36, %v868_v55  ;;  %1147 = vrot.lane.b32.xlu0 %v1146_v61, %s1227_s11  ;;  %v1145_v15 = vunpack.i.h.bf16 %v1143_v2  ;;  %v1144_v46 = vunpack.i.l.bf16 %v1143_v2 }
 0x30c   :  { %v1151_v14 = vpack.i.bf16 %v890_v56, %v889_v1 }
 0x30e   :  { %1157 = vrot.lane.b32.xlu0 %v1156_v54, %s1227_s11  ;;  %1152 = vrot.lane.b32.xlu1 %v1151_v14, %s1227_s11 }
 0x312   :  { %209 = vrot.lane.b32.xlu1 %v1192_v52, %s1226_s17 }
 0x37c   :  { %v1148_v4 = vpop.permute.xlu0 %1147 }
 0x37d   :  { %v1150_v10 = vunpack.i.h.bf16 %v1148_v4  ;;  %v1149_v11 = vunpack.i.l.bf16 %v1148_v4 }
 0x37f   :  { %v950_v5 = vsel %vm73_vm1, %v1145_v15, %v1150_v10  ;;  %v949_v63 = vsel %vm73_vm1, %v1144_v46, %v1149_v11 }
 0x380   :  { %v1153_v16 = vpop.permute.xlu1 %1152  ;;  %v1158_v42 = vpop.permute.xlu0 %1157 }
 0x381   :  { %v1155_v60 = vunpack.i.h.bf16 %v1153_v16  ;;  %v1154_v18 = vunpack.i.l.bf16 %v1153_v16  ;;  %v1160_v58 = vunpack.i.h.bf16 %v1158_v42  ;;  %v1159_v9 = vunpack.i.l.bf16 %v1158_v42 }
 0x383   :  { %v952_v12 = vsel %vm951_vm9, %v949_v63, %v1154_v18  ;;  %v953_v26 = vsel %vm951_vm9, %v950_v5, %v1155_v60 }
 0x384   :  { %v955_v29 = vsel %vm195_vm3, %v952_v12, %v1159_v9  ;;  %v956_v20 = vsel %vm195_vm3, %v953_v26, %v1160_v58  ;;  %v210_v32 = vpop.permute.xlu1 %209 }
 0x385   :  { %v957_v31 = vpack.c.bf16 %v956_v20, %v955_v29  ;;  %v212_v34 = vsel %vm73_vm1, %v1193_v0, %v210_v32 }
 0x387   :  { %1105 = vmatpush3.bf16.msra.mxu0 %v957_v31 }
 0x38a   :  { %1107 = vmatmul.mubr.msk.bf16.vlgmr.msra.gmra.mxu0 %vm692_vm2, %v968_v21 }
 0x44a   :  { %v1007_v35 = vpop.f32.mrf.mxu0 }
 0x44b   :  { %v1013_v3 = vadd.f32 %v1007_v35, %v212_v34 }
 0x44c   :  { %v1108_v37 = vpop.f32.mrf.mxu0 }
 0x44d   :  { %1014 = vst [vmem:[#allocation3] sm:$0xff] %v1013_v3 }
 0x44e   :  { %v1010_v43 = vpop.f32.mrf.mxu0 }
 0x44f   :  { %1205 = shalt.err (!%p1202_p4)
}
 0x450   :  { %1024 = dma.vmem_to_hbm [thread:$0]  %s1022_s10, 128, %s1704_s12, [#allocation4]   ;;  %v1109_v39 = vpop.f32.mrf.mxu0 }
 0x451   :  { %1214 = dma.done.wait [#allocation4], 128  }
 0x452   :  { %1215 = vsyncadd [#allocation4], 4294967168 }
 0x453   :  { %1028 = vsyncpa [#allocation4], 1 }

</bundles_post_ra>
